<compile_context>
chip_gen: v5e
topology: v5e:2x2
jax: 0.10.0
libtpu: 0.0.40
codegen_flags: <defaults>
</compile_context>

<pallas_src>
import functools

import jax
import jax.numpy as jnp
from jax.experimental import pallas as pl
from jax.experimental.pallas import tpu as pltpu

nINF = -100.0          # matches the PyTorch module's finite "-inf"
_NEG_BIG = -1.0e30     # padded-row fill: exp(_NEG_BIG - m) underflows to exactly 0
_OUT_LANES = 128       # lane-dense scalar output block

# CompilerParams name differs across jax releases; prefer the current one.
_CompilerParams = getattr(pltpu, "CompilerParams", None)
if _CompilerParams is None:  # pragma: no cover - older jax fallback
    _CompilerParams = getattr(pltpu, "TPUCompilerParams")


def _softplus(z):
    # numerically stable softplus: log(1 + exp(z))
    return jnp.maximum(z, 0.0) + jnp.log1p(jnp.exp(-jnp.abs(z)))


def _two_way_loss_kernel(x_ref, y_ref, out_ref,
                         m_p_ref, s_p_ref, m_n_ref, s_n_ref, cm_ref,
                         ssum_ref, scnt_ref,
                         *, Tp, Tn, N, tile_n):
    i = pl.program_id(0)
    num_tiles = pl.num_programs(0)

    @pl.when(i == 0)
    def _init():
        m_p_ref[...] = jnp.full_like(m_p_ref, _NEG_BIG)
        m_n_ref[...] = jnp.full_like(m_n_ref, _NEG_BIG)
        s_p_ref[...] = jnp.zeros_like(s_p_ref)
        s_n_ref[...] = jnp.zeros_like(s_n_ref)
        cm_ref[...] = jnp.zeros_like(cm_ref)
        ssum_ref[...] = jnp.zeros_like(ssum_ref)
        scnt_ref[...] = jnp.zeros_like(scnt_ref)

    # In-vreg upcast of the logits only; labels are compared in native dtype.
    x = x_ref[...].astype(jnp.float32)
    y_raw = y_ref[...]

    # Row-validity mask for the (possibly padded) remainder tile.
    row_ids = i * tile_n + jax.lax.broadcasted_iota(jnp.int32, (tile_n, 1), 0)
    valid = row_ids < N                                        # (tile_n, 1)

    pos = (y_raw > 0) & valid     # positives (real rows only)
    zero = (y_raw == 0) & valid   # negatives (real rows only)
    pmask = jnp.where(pos, 0.0, nINF)
    nmask = jnp.where(zero, 0.0, nINF)

    neg_inv_tp = -1.0 / Tp
    inv_tn = 1.0 / Tn
    # Padded rows -> _NEG_BIG so their exp contribution is exactly 0 (the where
    # also discards any NaN/Inf garbage living in the padded part of the block).
    ap = jnp.where(valid, x * neg_inv_tp + pmask, _NEG_BIG)
    an = jnp.where(valid, x * inv_tn + nmask, _NEG_BIG)

    # ---- class-axis (dim=0) online logsumexp, carried across the N-tiles ----
    tmax_p = jnp.max(ap, axis=0, keepdims=True)                # (1, C)
    new_m_p = jnp.maximum(m_p_ref[...], tmax_p)
    s_p_ref[...] = (s_p_ref[...] * jnp.exp(m_p_ref[...] - new_m_p)
                    + jnp.sum(jnp.exp(ap - new_m_p), axis=0, keepdims=True))
    m_p_ref[...] = new_m_p

    tmax_n = jnp.max(an, axis=0, keepdims=True)                # (1, C)
    new_m_n = jnp.maximum(m_n_ref[...], tmax_n)
    s_n_ref[...] = (s_n_ref[...] * jnp.exp(m_n_ref[...] - new_m_n)
                    + jnp.sum(jnp.exp(an - new_m_n), axis=0, keepdims=True))
    m_n_ref[...] = new_m_n

    posf = pos.astype(jnp.float32)
    cm_ref[...] = jnp.maximum(cm_ref[...], jnp.max(posf, axis=0, keepdims=True))

    # ---- sample-axis (dim=1) logsumexp, local to this tile ----
    # Lane-axis sums go to the MXU (idle otherwise); only the max stays on the XLU.
    ones_c = jnp.ones((ap.shape[1], 1), jnp.float32)
    rmax_p = jnp.max(ap, axis=1, keepdims=True)                        # (tile_n, 1)
    sum_p = jnp.dot(jnp.exp(ap - rmax_p), ones_c,
                    preferred_element_type=jnp.float32)                # (tile_n, 1)
    plogit_s = Tp * (rmax_p + jnp.log(sum_p))

    rmax_n = jnp.max(an, axis=1, keepdims=True)
    sum_n = jnp.dot(jnp.exp(an - rmax_n), ones_c,
                    preferred_element_type=jnp.float32)
    nlogit_s = Tn * (rmax_n + jnp.log(sum_n))

    z_s = _softplus(nlogit_s + plogit_s)                               # (tile_n, 1)
    # sample mask via MXU row-count of positives (exact 0/1 sums)
    row_pos = jnp.dot(posf, ones_c, preferred_element_type=jnp.float32)
    smask = row_pos > 0.0                                              # (tile_n, 1)
    ssum_ref[...] += jnp.sum(jnp.where(smask, z_s, 0.0), keepdims=True)
    scnt_ref[...] += jnp.sum(smask.astype(jnp.float32), keepdims=True)

    # ---- finalize on the last tile ----
    @pl.when(i == num_tiles - 1)
    def _finalize():
        plogit_c = Tp * (m_p_ref[...] + jnp.log(s_p_ref[...]))         # (1, C)
        nlogit_c = Tn * (m_n_ref[...] + jnp.log(s_n_ref[...]))         # (1, C)
        z_c = _softplus(nlogit_c + plogit_c)
        cmask = cm_ref[...] > 0.0
        c_sum = jnp.sum(jnp.where(cmask, z_c, 0.0), keepdims=True)     # (1, 1)
        c_cnt = jnp.sum(cmask.astype(jnp.float32), keepdims=True)      # (1, 1)
        total = c_sum / c_cnt + ssum_ref[...] / scnt_ref[...]          # (1, 1)
        out_ref[...] = jnp.broadcast_to(total, out_ref.shape)


def _pick_tile_n(N, C, itemsize_x, itemsize_y):
    """Size TILE_N so double-buffered x+y blocks (plus in-kernel f32 temps) fit a
    conservative VMEM budget (safe on v7x's 64 MiB VMEM and under v5e's tighter
    default scoped limit)."""
    budget_bytes = 12 * 1024 * 1024
    per_row = C * (itemsize_x + itemsize_y) * 2     # x & y, each double-buffered
    t = budget_bytes // max(per_row, 1)
    t = max(8, min(1024, t))
    t = (t // 8) * 8                                # (8, 128) sublane constraint
    if N <= t:
        return N                                    # full-dim block is always legal
    return t


def two_way_loss(x, y, Tp=4.0, Tn=1.0, tile_n=None):
    """Pallas TPU implementation of TwoWayLoss.forward(x, y) -> scalar."""
    N, C = x.shape
    assert y.shape == (N, C), (x.shape, y.shape)

    if tile_n is None:
        tile_n = _pick_tile_n(N, C, x.dtype.itemsize, y.dtype.itemsize)
    tile_n = min(int(tile_n), N)
    if tile_n != N and tile_n % 8 != 0:
        tile_n = max(8, (tile_n // 8) * 8)

    num_tiles = pl.cdiv(N, tile_n)
    kernel = functools.partial(_two_way_loss_kernel,
                               Tp=float(Tp), Tn=float(Tn), N=int(N), tile_n=int(tile_n))

    out = pl.pallas_call(
        kernel,
        out_shape=jax.ShapeDtypeStruct((1, _OUT_LANES), jnp.float32),
        grid_spec=pltpu.PrefetchScalarGridSpec(
            num_scalar_prefetch=0,
            grid=(num_tiles,),
            in_specs=[
                pl.BlockSpec((tile_n, C), lambda i: (i, 0)),   # x tile
                pl.BlockSpec((tile_n, C), lambda i: (i, 0)),   # y tile
            ],
            out_specs=pl.BlockSpec((1, _OUT_LANES), lambda i: (0, 0)),
            scratch_shapes=[
                pltpu.VMEM((1, C), jnp.float32),   # running max, positive branch
                pltpu.VMEM((1, C), jnp.float32),   # running sum, positive branch
                pltpu.VMEM((1, C), jnp.float32),   # running max, negative branch
                pltpu.VMEM((1, C), jnp.float32),   # running sum, negative branch
                pltpu.VMEM((1, C), jnp.float32),   # class-mask accumulator
                pltpu.VMEM((1, 1), jnp.float32),   # sample-term masked sum
                pltpu.VMEM((1, 1), jnp.float32),   # sample-term count
            ],
        ),
        compiler_params=_CompilerParams(
            dimension_semantics=("arbitrary",),        # accumulators carried across tiles
            vmem_limit_bytes=32 * 1024 * 1024,
        ),
        # NOTE: inputs are passed in their native dtype — no host-side astype.
    )(x, y)
    return out[0, 0]


def two_way_loss_ref(x, y, Tp=4.0, Tn=1.0):
    """Pure-JAX reference mirroring the PyTorch forward exactly."""
    class_mask = jnp.any(y > 0, axis=0)
    sample_mask = jnp.any(y > 0, axis=1)
    pmask = jnp.where(y > 0, 0.0, nINF)
    nmask = jnp.where(y == 0, 0.0, nINF)
    plogit_class = Tp * jax.scipy.special.logsumexp(-x / Tp + pmask, axis=0)
    plogit_sample = Tp * jax.scipy.special.logsumexp(-x / Tp + pmask, axis=1)
    nlogit_class = Tn * jax.scipy.special.logsumexp(x / Tn + nmask, axis=0)
    nlogit_sample = Tn * jax.scipy.special.logsumexp(x / Tn + nmask, axis=1)
    zc = jax.nn.softplus(nlogit_class + plogit_class)
    zs = jax.nn.softplus(nlogit_sample + plogit_sample)
    c_mean = jnp.sum(jnp.where(class_mask, zc, 0.0)) / jnp.sum(class_mask)
    s_mean = jnp.sum(jnp.where(sample_mask, zs, 0.0)) / jnp.sum(sample_mask)
    return c_mean + s_mean


if __name__ == "__main__":
    # Small multi-label problem: batch N=20 (exercises remainder-tile masking
    # when forced to 8-row tiles), classes C=128 (lane-aligned).
    key = jax.random.PRNGKey(0)
    kx, ky = jax.random.split(key)
    N, C = 20, 128
    x = jax.random.normal(kx, (N, C), dtype=jnp.float32).astype(jnp.bfloat16)   # logits, native bf16
    y = (jax.random.uniform(ky, (N, C)) > 0.7).astype(jnp.bfloat16)             # {0,1} labels
    y = y.at[3].set(0.0)   # one all-negative row -> exercises the sample mask

    ref = jax.block_until_ready(
        two_way_loss_ref(x.astype(jnp.float32), y.astype(jnp.float32), Tp=4.0, Tn=1.0))

    # Multi-tile path: 3 grid steps (8, 8, 4-row remainder) -> exercises the
    # online-LSE accumulators and padded-row masking.
    loss_tiled = jax.block_until_ready(two_way_loss(x, y, Tp=4.0, Tn=1.0, tile_n=8))
    # Auto tile size (single tile at this problem size).
    loss_auto = jax.block_until_ready(two_way_loss(x, y, Tp=4.0, Tn=1.0))

    assert jnp.allclose(loss_tiled, ref, rtol=1e-2, atol=1e-2), (loss_tiled, ref)
    assert jnp.allclose(loss_auto, ref, rtol=1e-2, atol=1e-2), (loss_auto, ref)

    print("KERNEL_OK")
</pallas_src>

<mosaic_0001>
module attributes {stable_mosaic.version = 11 : i64} {
  func.func @_two_way_loss_kernel(%arg0: i32, %arg1: memref<8x128xbf16, #tpu.memory_space<vmem>>, %arg2: memref<8x128xbf16, #tpu.memory_space<vmem>>, %arg3: memref<1x128xf32, #tpu.memory_space<vmem>>, %arg4: memref<1x128xf32, #tpu.memory_space<vmem>>, %arg5: memref<1x128xf32, #tpu.memory_space<vmem>>, %arg6: memref<1x128xf32, #tpu.memory_space<vmem>>, %arg7: memref<1x128xf32, #tpu.memory_space<vmem>>, %arg8: memref<1x128xf32, #tpu.memory_space<vmem>>, %arg9: memref<1x1xf32, #tpu.memory_space<vmem>>, %arg10: memref<1x1xf32, #tpu.memory_space<vmem>>) attributes {dimension_semantics = [#tpu.dimension_semantics<arbitrary>], iteration_bounds = array<i64: 3>, scalar_prefetch = 0 : i64, scratch_operands = 7 : i64, tpu.core_type = #tpu.core_type<tc>, window_params = [{transform_indices = @transform_0, window_bounds = array<i64: 8, 128>}, {transform_indices = @transform_1, window_bounds = array<i64: 8, 128>}, {pipeline_mode = #tpu.pipeline_mode<synchronous>, transform_indices = @transform_2, window_bounds = array<i64: 1, 128>}]} {
    %c0_i32 = arith.constant 0 : i32
    %0 = arith.cmpi eq, %arg0, %c0_i32 : i32
    %1 = arith.extui %0 : i1 to i32
    %c0_i32_0 = arith.constant 0 : i32
    %2 = arith.cmpi ne, %1, %c0_i32_0 : i32
    scf.if %2 {
      %cst_65 = arith.constant -1.000000e+30 : f32
      %137 = vector.broadcast %cst_65 : f32 to vector<1x128xf32>
      %c0_66 = arith.constant 0 : index
      %c0_67 = arith.constant 0 : index
      %138 = vector.load %arg4[%c0_66, %c0_67] : memref<1x128xf32, #tpu.memory_space<vmem>>, vector<1x128xf32>
      tpu.vector_store %arg4[%c0_66, %c0_67], %137 {strides = array<i32>} : memref<1x128xf32, #tpu.memory_space<vmem>>, vector<1x128xf32>,
      %cst_68 = arith.constant -1.000000e+30 : f32
      %139 = vector.broadcast %cst_68 : f32 to vector<1x128xf32>
      %c0_69 = arith.constant 0 : index
      %c0_70 = arith.constant 0 : index
      %140 = vector.load %arg6[%c0_69, %c0_70] : memref<1x128xf32, #tpu.memory_space<vmem>>, vector<1x128xf32>
      tpu.vector_store %arg6[%c0_69, %c0_70], %139 {strides = array<i32>} : memref<1x128xf32, #tpu.memory_space<vmem>>, vector<1x128xf32>,
      %cst_71 = arith.constant 0.000000e+00 : f32
      %141 = vector.broadcast %cst_71 : f32 to vector<1x128xf32>
      %c0_72 = arith.constant 0 : index
      %c0_73 = arith.constant 0 : index
      %142 = vector.load %arg5[%c0_72, %c0_73] : memref<1x128xf32, #tpu.memory_space<vmem>>, vector<1x128xf32>
      tpu.vector_store %arg5[%c0_72, %c0_73], %141 {strides = array<i32>} : memref<1x128xf32, #tpu.memory_space<vmem>>, vector<1x128xf32>,
      %cst_74 = arith.constant 0.000000e+00 : f32
      %143 = vector.broadcast %cst_74 : f32 to vector<1x128xf32>
      %c0_75 = arith.constant 0 : index
      %c0_76 = arith.constant 0 : index
      %144 = vector.load %arg7[%c0_75, %c0_76] : memref<1x128xf32, #tpu.memory_space<vmem>>, vector<1x128xf32>
      tpu.vector_store %arg7[%c0_75, %c0_76], %143 {strides = array<i32>} : memref<1x128xf32, #tpu.memory_space<vmem>>, vector<1x128xf32>,
      %cst_77 = arith.constant 0.000000e+00 : f32
      %145 = vector.broadcast %cst_77 : f32 to vector<1x128xf32>
      %c0_78 = arith.constant 0 : index
      %c0_79 = arith.constant 0 : index
      %146 = vector.load %arg8[%c0_78, %c0_79] : memref<1x128xf32, #tpu.memory_space<vmem>>, vector<1x128xf32>
      tpu.vector_store %arg8[%c0_78, %c0_79], %145 {strides = array<i32>} : memref<1x128xf32, #tpu.memory_space<vmem>>, vector<1x128xf32>,
      %cst_80 = arith.constant 0.000000e+00 : f32
      %147 = vector.broadcast %cst_80 : f32 to vector<1x1xf32>
      %c0_81 = arith.constant 0 : index
      %c0_82 = arith.constant 0 : index
      %148 = vector.load %arg9[%c0_81, %c0_82] : memref<1x1xf32, #tpu.memory_space<vmem>>, vector<1x1xf32>
      tpu.vector_store %arg9[%c0_81, %c0_82], %147 {strides = array<i32>} : memref<1x1xf32, #tpu.memory_space<vmem>>, vector<1x1xf32>,
      %cst_83 = arith.constant 0.000000e+00 : f32
      %149 = vector.broadcast %cst_83 : f32 to vector<1x1xf32>
      %c0_84 = arith.constant 0 : index
      %c0_85 = arith.constant 0 : index
      %150 = vector.load %arg10[%c0_84, %c0_85] : memref<1x1xf32, #tpu.memory_space<vmem>>, vector<1x1xf32>
      tpu.vector_store %arg10[%c0_84, %c0_85], %149 {strides = array<i32>} : memref<1x1xf32, #tpu.memory_space<vmem>>, vector<1x1xf32>,
    } else {
    }
    %c0 = arith.constant 0 : index
    %c0_1 = arith.constant 0 : index
    %3 = vector.load %arg1[%c0, %c0_1] : memref<8x128xbf16, #tpu.memory_space<vmem>>, vector<8x128xbf16>
    %4 = arith.extf %3 : vector<8x128xbf16> to vector<8x128xf32>
    %c0_2 = arith.constant 0 : index
    %c0_3 = arith.constant 0 : index
    %5 = vector.load %arg2[%c0_2, %c0_3] : memref<8x128xbf16, #tpu.memory_space<vmem>>, vector<8x128xbf16>
    %c8_i32 = arith.constant 8 : i32
    %6 = arith.muli %arg0, %c8_i32 : i32
    %7 = tpu.iota {dimensions = array<i32: 0>} : vector<8x1xi32>
    %8 = vector.broadcast %6 : i32 to vector<8x1xi32>
    %9 = arith.addi %8, %7 : vector<8x1xi32>
    %c20_i32 = arith.constant 20 : i32
    %10 = vector.broadcast %c20_i32 : i32 to vector<8x1xi32>
    %11 = arith.cmpi slt, %9, %10 : vector<8x1xi32>
    %cst = arith.constant 0.000000e+00 : bf16
    %12 = vector.broadcast %cst : bf16 to vector<8x128xbf16>
    %13 = arith.cmpf ogt, %5, %12 : vector<8x128xbf16>
    %14 = vector.broadcast %11 : vector<8x1xi1> to vector<8x128xi1>
    %15 = arith.andi %13, %14 : vector<8x128xi1>
    %cst_4 = arith.constant 0.000000e+00 : bf16
    %16 = vector.broadcast %cst_4 : bf16 to vector<8x128xbf16>
    %17 = arith.cmpf oeq, %5, %16 : vector<8x128xbf16>
    %18 = vector.broadcast %11 : vector<8x1xi1> to vector<8x128xi1>
    %19 = arith.andi %17, %18 : vector<8x128xi1>
    %cst_5 = arith.constant 0.000000e+00 : f32
    %cst_6 = arith.constant -1.000000e+02 : f32
    %20 = vector.broadcast %cst_5 : f32 to vector<8x128xf32>
    %21 = vector.broadcast %cst_6 : f32 to vector<8x128xf32>
    %22 = arith.select %15, %20, %21 : vector<8x128xi1>, vector<8x128xf32>
    %cst_7 = arith.constant 0.000000e+00 : f32
    %cst_8 = arith.constant -1.000000e+02 : f32
    %23 = vector.broadcast %cst_7 : f32 to vector<8x128xf32>
    %24 = vector.broadcast %cst_8 : f32 to vector<8x128xf32>
    %25 = arith.select %19, %23, %24 : vector<8x128xi1>, vector<8x128xf32>
    %cst_9 = arith.constant -2.500000e-01 : f32
    %26 = vector.broadcast %cst_9 : f32 to vector<8x128xf32>
    %27 = arith.mulf %4, %26 : vector<8x128xf32>
    %28 = arith.addf %27, %22 : vector<8x128xf32>
    %cst_10 = arith.constant -1.000000e+30 : f32
    %29 = vector.shape_cast %11 : vector<8x1xi1> to vector<8x1xi1>
    %30 = vector.broadcast %29 : vector<8x1xi1> to vector<8x128xi1>
    %31 = vector.broadcast %cst_10 : f32 to vector<8x128xf32>
    %32 = arith.select %30, %28, %31 : vector<8x128xi1>, vector<8x128xf32>
    %cst_11 = arith.constant 1.000000e+00 : f32
    %33 = vector.broadcast %cst_11 : f32 to vector<8x128xf32>
    %34 = arith.mulf %4, %33 : vector<8x128xf32>
    %35 = arith.addf %34, %25 : vector<8x128xf32>
    %cst_12 = arith.constant -1.000000e+30 : f32
    %36 = vector.shape_cast %11 : vector<8x1xi1> to vector<8x1xi1>
    %37 = vector.broadcast %36 : vector<8x1xi1> to vector<8x128xi1>
    %38 = vector.broadcast %cst_12 : f32 to vector<8x128xf32>
    %39 = arith.select %37, %35, %38 : vector<8x128xi1>, vector<8x128xf32>
    %cst_13 = arith.constant dense<0xFF800000> : vector<128xf32>
    %40 = vector.multi_reduction <maximumf>, %32, %cst_13 [0] : vector<8x128xf32> to vector<128xf32>
    %41 = vector.shape_cast %40 : vector<128xf32> to vector<1x128xf32>
    %c0_14 = arith.constant 0 : index
    %c0_15 = arith.constant 0 : index
    %42 = vector.load %arg4[%c0_14, %c0_15] : memref<1x128xf32, #tpu.memory_space<vmem>>, vector<1x128xf32>
    %43 = arith.maximumf %42, %41 : vector<1x128xf32>
    %c0_16 = arith.constant 0 : index
    %c0_17 = arith.constant 0 : index
    %44 = vector.load %arg5[%c0_16, %c0_17] : memref<1x128xf32, #tpu.memory_space<vmem>>, vector<1x128xf32>
    %c0_18 = arith.constant 0 : index
    %c0_19 = arith.constant 0 : index
    %45 = vector.load %arg4[%c0_18, %c0_19] : memref<1x128xf32, #tpu.memory_space<vmem>>, vector<1x128xf32>
    %46 = arith.subf %45, %43 : vector<1x128xf32>
    %47 = math.exp %46 : vector<1x128xf32>
    %48 = arith.mulf %44, %47 : vector<1x128xf32>
    %49 = vector.broadcast %43 : vector<1x128xf32> to vector<8x128xf32>
    %50 = arith.subf %32, %49 : vector<8x128xf32>
    %51 = math.exp %50 : vector<8x128xf32>
    %cst_20 = arith.constant dense<0.000000e+00> : vector<128xf32>
    %52 = vector.multi_reduction <add>, %51, %cst_20 [0] : vector<8x128xf32> to vector<128xf32>
    %53 = vector.shape_cast %52 : vector<128xf32> to vector<1x128xf32>
    %54 = arith.addf %48, %53 : vector<1x128xf32>
    %c0_21 = arith.constant 0 : index
    %c0_22 = arith.constant 0 : index
    %55 = vector.load %arg5[%c0_21, %c0_22] : memref<1x128xf32, #tpu.memory_space<vmem>>, vector<1x128xf32>
    tpu.vector_store %arg5[%c0_21, %c0_22], %54 {strides = array<i32>} : memref<1x128xf32, #tpu.memory_space<vmem>>, vector<1x128xf32>,
    %c0_23 = arith.constant 0 : index
    %c0_24 = arith.constant 0 : index
    %56 = vector.load %arg4[%c0_23, %c0_24] : memref<1x128xf32, #tpu.memory_space<vmem>>, vector<1x128xf32>
    tpu.vector_store %arg4[%c0_23, %c0_24], %43 {strides = array<i32>} : memref<1x128xf32, #tpu.memory_space<vmem>>, vector<1x128xf32>,
    %cst_25 = arith.constant dense<0xFF800000> : vector<128xf32>
    %57 = vector.multi_reduction <maximumf>, %39, %cst_25 [0] : vector<8x128xf32> to vector<128xf32>
    %58 = vector.shape_cast %57 : vector<128xf32> to vector<1x128xf32>
    %c0_26 = arith.constant 0 : index
    %c0_27 = arith.constant 0 : index
    %59 = vector.load %arg6[%c0_26, %c0_27] : memref<1x128xf32, #tpu.memory_space<vmem>>, vector<1x128xf32>
    %60 = arith.maximumf %59, %58 : vector<1x128xf32>
    %c0_28 = arith.constant 0 : index
    %c0_29 = arith.constant 0 : index
    %61 = vector.load %arg7[%c0_28, %c0_29] : memref<1x128xf32, #tpu.memory_space<vmem>>, vector<1x128xf32>
    %c0_30 = arith.constant 0 : index
    %c0_31 = arith.constant 0 : index
    %62 = vector.load %arg6[%c0_30, %c0_31] : memref<1x128xf32, #tpu.memory_space<vmem>>, vector<1x128xf32>
    %63 = arith.subf %62, %60 : vector<1x128xf32>
    %64 = math.exp %63 : vector<1x128xf32>
    %65 = arith.mulf %61, %64 : vector<1x128xf32>
    %66 = vector.broadcast %60 : vector<1x128xf32> to vector<8x128xf32>
    %67 = arith.subf %39, %66 : vector<8x128xf32>
    %68 = math.exp %67 : vector<8x128xf32>
    %cst_32 = arith.constant dense<0.000000e+00> : vector<128xf32>
    %69 = vector.multi_reduction <add>, %68, %cst_32 [0] : vector<8x128xf32> to vector<128xf32>
    %70 = vector.shape_cast %69 : vector<128xf32> to vector<1x128xf32>
    %71 = arith.addf %65, %70 : vector<1x128xf32>
    %c0_33 = arith.constant 0 : index
    %c0_34 = arith.constant 0 : index
    %72 = vector.load %arg7[%c0_33, %c0_34] : memref<1x128xf32, #tpu.memory_space<vmem>>, vector<1x128xf32>
    tpu.vector_store %arg7[%c0_33, %c0_34], %71 {strides = array<i32>} : memref<1x128xf32, #tpu.memory_space<vmem>>, vector<1x128xf32>,
    %c0_35 = arith.constant 0 : index
    %c0_36 = arith.constant 0 : index
    %73 = vector.load %arg6[%c0_35, %c0_36] : memref<1x128xf32, #tpu.memory_space<vmem>>, vector<1x128xf32>
    tpu.vector_store %arg6[%c0_35, %c0_36], %60 {strides = array<i32>} : memref<1x128xf32, #tpu.memory_space<vmem>>, vector<1x128xf32>,
    %74 = arith.extui %15 : vector<8x128xi1> to vector<8x128xi32>
    %75 = arith.sitofp %74 : vector<8x128xi32> to vector<8x128xf32>
    %c0_37 = arith.constant 0 : index
    %c0_38 = arith.constant 0 : index
    %76 = vector.load %arg8[%c0_37, %c0_38] : memref<1x128xf32, #tpu.memory_space<vmem>>, vector<1x128xf32>
    %cst_39 = arith.constant dense<0xFF800000> : vector<128xf32>
    %77 = vector.multi_reduction <maximumf>, %75, %cst_39 [0] : vector<8x128xf32> to vector<128xf32>
    %78 = vector.shape_cast %77 : vector<128xf32> to vector<1x128xf32>
    %79 = arith.maximumf %76, %78 : vector<1x128xf32>
    %c0_40 = arith.constant 0 : index
    %c0_41 = arith.constant 0 : index
    %80 = vector.load %arg8[%c0_40, %c0_41] : memref<1x128xf32, #tpu.memory_space<vmem>>, vector<1x128xf32>
    tpu.vector_store %arg8[%c0_40, %c0_41], %79 {strides = array<i32>} : memref<1x128xf32, #tpu.memory_space<vmem>>, vector<1x128xf32>,
    %cst_42 = arith.constant 1.000000e+00 : f32
    %81 = vector.broadcast %cst_42 : f32 to vector<128x1xf32>
    %cst_43 = arith.constant dense<0xFF800000> : vector<8xf32>
    %82 = vector.multi_reduction <maximumf>, %32, %cst_43 [1] : vector<8x128xf32> to vector<8xf32>
    %83 = vector.shape_cast %82 : vector<8xf32> to vector<8x1xf32>
    %84 = vector.broadcast %83 : vector<8x1xf32> to vector<8x128xf32>
    %85 = arith.subf %32, %84 : vector<8x128xf32>
    %86 = math.exp %85 : vector<8x128xf32>
    %cst_44 = arith.constant dense<0.000000e+00> : vector<8x1xf32>
    %87 = tpu.matmul %86, %81, %cst_44 {dimension_numbers = #tpu.dot_dimension_numbers<[1], [0], [0], [1], [0, 0, 1, 1], [], []>} : vector<8x128xf32>, vector<128x1xf32>, vector<8x1xf32> -> vector<8x1xf32>
    %88 = math.log %87 : vector<8x1xf32>
    %89 = arith.addf %83, %88 : vector<8x1xf32>
    %cst_45 = arith.constant 4.000000e+00 : f32
    %90 = vector.broadcast %cst_45 : f32 to vector<8x1xf32>
    %91 = arith.mulf %90, %89 : vector<8x1xf32>
    %cst_46 = arith.constant dense<0xFF800000> : vector<8xf32>
    %92 = vector.multi_reduction <maximumf>, %39, %cst_46 [1] : vector<8x128xf32> to vector<8xf32>
    %93 = vector.shape_cast %92 : vector<8xf32> to vector<8x1xf32>
    %94 = vector.broadcast %93 : vector<8x1xf32> to vector<8x128xf32>
    %95 = arith.subf %39, %94 : vector<8x128xf32>
    %96 = math.exp %95 : vector<8x128xf32>
    %cst_47 = arith.constant dense<0.000000e+00> : vector<8x1xf32>
    %97 = tpu.matmul %96, %81, %cst_47 {dimension_numbers = #tpu.dot_dimension_numbers<[1], [0], [0], [1], [0, 0, 1, 1], [], []>} : vector<8x128xf32>, vector<128x1xf32>, vector<8x1xf32> -> vector<8x1xf32>
    %98 = math.log %97 : vector<8x1xf32>
    %99 = arith.addf %93, %98 : vector<8x1xf32>
    %cst_48 = arith.constant 1.000000e+00 : f32
    %100 = vector.broadcast %cst_48 : f32 to vector<8x1xf32>
    %101 = arith.mulf %100, %99 : vector<8x1xf32>
    %102 = arith.addf %101, %91 : vector<8x1xf32>
    %cst_49 = arith.constant 0.000000e+00 : f32
    %103 = vector.broadcast %cst_49 : f32 to vector<8x1xf32>
    %104 = arith.maximumf %102, %103 : vector<8x1xf32>
    %105 = math.absf %102 : vector<8x1xf32>
    %cst_50 = arith.constant 0.000000e+00 : f32
    %106 = vector.broadcast %cst_50 : f32 to vector<8x1xf32>
    %107 = arith.subf %106, %105 : vector<8x1xf32>
    %108 = math.exp %107 : vector<8x1xf32>
    %109 = math.log1p %108 : vector<8x1xf32>
    %110 = arith.addf %104, %109 : vector<8x1xf32>
    %cst_51 = arith.constant dense<0.000000e+00> : vector<8x1xf32>
    %111 = tpu.matmul %75, %81, %cst_51 {dimension_numbers = #tpu.dot_dimension_numbers<[1], [0], [0], [1], [0, 0, 1, 1], [], []>} : vector<8x128xf32>, vector<128x1xf32>, vector<8x1xf32> -> vector<8x1xf32>
    %cst_52 = arith.constant 0.000000e+00 : f32
    %112 = vector.broadcast %cst_52 : f32 to vector<8x1xf32>
    %113 = arith.cmpf ogt, %111, %112 : vector<8x1xf32>
    %c0_53 = arith.constant 0 : index
    %c0_54 = arith.constant 0 : index
    %114 = vector.load %arg9[%c0_53, %c0_54] : memref<1x1xf32, #tpu.memory_space<vmem>>, vector<1x1xf32>
    %cst_55 = arith.constant 0.000000e+00 : f32
    %115 = vector.broadcast %cst_55 : f32 to vector<8x1xf32>
    %116 = arith.select %113, %110, %115 : vector<8x1xi1>, vector<8x1xf32>
    %117 = vector.shape_cast %116 : vector<8x1xf32> to vector<1x8x1xf32>
    %cst_56 = arith.constant dense<0.000000e+00> : vector<1xf32>
    %118 = vector.multi_reduction <add>, %117, %cst_56 [1, 2] : vector<1x8x1xf32> to vector<1xf32>
    %119 = vector.shape_cast %118 : vector<1xf32> to vector<1x1x1xf32>
    %120 = vector.extract %119[0, 0, 0] : f32 from vector<1x1x1xf32>
    %121 = vector.broadcast %120 : f32 to vector<1x1xf32>
    %122 = arith.addf %114, %121 : vector<1x1xf32>
    %c0_57 = arith.constant 0 : index
    %c0_58 = arith.constant 0 : index
    %123 = vector.load %arg9[%c0_57, %c0_58] : memref<1x1xf32, #tpu.memory_space<vmem>>, vector<1x1xf32>
    tpu.vector_store %arg9[%c0_57, %c0_58], %122 {strides = array<i32>} : memref<1x1xf32, #tpu.memory_space<vmem>>, vector<1x1xf32>,
    %c0_59 = arith.constant 0 : index
    %c0_60 = arith.constant 0 : index
    %124 = vector.load %arg10[%c0_59, %c0_60] : memref<1x1xf32, #tpu.memory_space<vmem>>, vector<1x1xf32>
    %125 = arith.extui %113 : vector<8x1xi1> to vector<8x1xi32>
    %126 = arith.sitofp %125 : vector<8x1xi32> to vector<8x1xf32>
    %127 = vector.shape_cast %126 : vector<8x1xf32> to vector<1x8x1xf32>
    %cst_61 = arith.constant dense<0.000000e+00> : vector<1xf32>
    %128 = vector.multi_reduction <add>, %127, %cst_61 [1, 2] : vector<1x8x1xf32> to vector<1xf32>
    %129 = vector.shape_cast %128 : vector<1xf32> to vector<1x1x1xf32>
    %130 = vector.extract %129[0, 0, 0] : f32 from vector<1x1x1xf32>
    %131 = vector.broadcast %130 : f32 to vector<1x1xf32>
    %132 = arith.addf %124, %131 : vector<1x1xf32>
    %c0_62 = arith.constant 0 : index
    %c0_63 = arith.constant 0 : index
    %133 = vector.load %arg10[%c0_62, %c0_63] : memref<1x1xf32, #tpu.memory_space<vmem>>, vector<1x1xf32>
    tpu.vector_store %arg10[%c0_62, %c0_63], %132 {strides = array<i32>} : memref<1x1xf32, #tpu.memory_space<vmem>>, vector<1x1xf32>,
    %c2_i32 = arith.constant 2 : i32
    %134 = arith.cmpi eq, %arg0, %c2_i32 : i32
    %135 = arith.extui %134 : i1 to i32
    %c0_i32_64 = arith.constant 0 : i32
    %136 = arith.cmpi ne, %135, %c0_i32_64 : i32
    scf.if %136 {
      %c0_65 = arith.constant 0 : index
      %c0_66 = arith.constant 0 : index
      %137 = vector.load %arg4[%c0_65, %c0_66] : memref<1x128xf32, #tpu.memory_space<vmem>>, vector<1x128xf32>
      %c0_67 = arith.constant 0 : index
      %c0_68 = arith.constant 0 : index
      %138 = vector.load %arg5[%c0_67, %c0_68] : memref<1x128xf32, #tpu.memory_space<vmem>>, vector<1x128xf32>
      %139 = math.log %138 : vector<1x128xf32>
      %140 = arith.addf %137, %139 : vector<1x128xf32>
      %cst_69 = arith.constant 4.000000e+00 : f32
      %141 = vector.broadcast %cst_69 : f32 to vector<1x128xf32>
      %142 = arith.mulf %141, %140 : vector<1x128xf32>
      %c0_70 = arith.constant 0 : index
      %c0_71 = arith.constant 0 : index
      %143 = vector.load %arg6[%c0_70, %c0_71] : memref<1x128xf32, #tpu.memory_space<vmem>>, vector<1x128xf32>
      %c0_72 = arith.constant 0 : index
      %c0_73 = arith.constant 0 : index
      %144 = vector.load %arg7[%c0_72, %c0_73] : memref<1x128xf32, #tpu.memory_space<vmem>>, vector<1x128xf32>
      %145 = math.log %144 : vector<1x128xf32>
      %146 = arith.addf %143, %145 : vector<1x128xf32>
      %cst_74 = arith.constant 1.000000e+00 : f32
      %147 = vector.broadcast %cst_74 : f32 to vector<1x128xf32>
      %148 = arith.mulf %147, %146 : vector<1x128xf32>
      %149 = arith.addf %148, %142 : vector<1x128xf32>
      %cst_75 = arith.constant 0.000000e+00 : f32
      %150 = vector.broadcast %cst_75 : f32 to vector<1x128xf32>
      %151 = arith.maximumf %149, %150 : vector<1x128xf32>
      %152 = math.absf %149 : vector<1x128xf32>
      %cst_76 = arith.constant 0.000000e+00 : f32
      %153 = vector.broadcast %cst_76 : f32 to vector<1x128xf32>
      %154 = arith.subf %153, %152 : vector<1x128xf32>
      %155 = math.exp %154 : vector<1x128xf32>
      %156 = math.log1p %155 : vector<1x128xf32>
      %157 = arith.addf %151, %156 : vector<1x128xf32>
      %c0_77 = arith.constant 0 : index
      %c0_78 = arith.constant 0 : index
      %158 = vector.load %arg8[%c0_77, %c0_78] : memref<1x128xf32, #tpu.memory_space<vmem>>, vector<1x128xf32>
      %cst_79 = arith.constant 0.000000e+00 : f32
      %159 = vector.broadcast %cst_79 : f32 to vector<1x128xf32>
      %160 = arith.cmpf ogt, %158, %159 : vector<1x128xf32>
      %cst_80 = arith.constant 0.000000e+00 : f32
      %161 = vector.broadcast %cst_80 : f32 to vector<1x128xf32>
      %162 = arith.select %160, %157, %161 : vector<1x128xi1>, vector<1x128xf32>
      %163 = vector.shape_cast %162 : vector<1x128xf32> to vector<1x1x128xf32>
      %cst_81 = arith.constant dense<0.000000e+00> : vector<1xf32>
      %164 = vector.multi_reduction <add>, %163, %cst_81 [1, 2] : vector<1x1x128xf32> to vector<1xf32>
      %165 = vector.shape_cast %164 : vector<1xf32> to vector<1x1x1xf32>
      %166 = vector.extract %165[0, 0, 0] : f32 from vector<1x1x1xf32>
      %167 = vector.broadcast %166 : f32 to vector<1x1xf32>
      %168 = arith.extui %160 : vector<1x128xi1> to vector<1x128xi32>
      %169 = arith.sitofp %168 : vector<1x128xi32> to vector<1x128xf32>
      %170 = vector.shape_cast %169 : vector<1x128xf32> to vector<1x1x128xf32>
      %cst_82 = arith.constant dense<0.000000e+00> : vector<1xf32>
      %171 = vector.multi_reduction <add>, %170, %cst_82 [1, 2] : vector<1x1x128xf32> to vector<1xf32>
      %172 = vector.shape_cast %171 : vector<1xf32> to vector<1x1x1xf32>
      %173 = vector.extract %172[0, 0, 0] : f32 from vector<1x1x1xf32>
      %174 = vector.broadcast %173 : f32 to vector<1x1xf32>
      %175 = arith.divf %167, %174 : vector<1x1xf32>
      %c0_83 = arith.constant 0 : index
      %c0_84 = arith.constant 0 : index
      %176 = vector.load %arg9[%c0_83, %c0_84] : memref<1x1xf32, #tpu.memory_space<vmem>>, vector<1x1xf32>
      %c0_85 = arith.constant 0 : index
      %c0_86 = arith.constant 0 : index
      %177 = vector.load %arg10[%c0_85, %c0_86] : memref<1x1xf32, #tpu.memory_space<vmem>>, vector<1x1xf32>
      %178 = arith.divf %176, %177 : vector<1x1xf32>
      %179 = arith.addf %175, %178 : vector<1x1xf32>
      %180 = vector.shape_cast %179 : vector<1x1xf32> to vector<1x1xf32>
      %181 = vector.broadcast %180 : vector<1x1xf32> to vector<1x128xf32>
      %c0_87 = arith.constant 0 : index
      %c0_88 = arith.constant 0 : index
      %182 = vector.load %arg3[%c0_87, %c0_88] : memref<1x128xf32, #tpu.memory_space<vmem>>, vector<1x128xf32>
      tpu.vector_store %arg3[%c0_87, %c0_88], %181 {strides = array<i32>} : memref<1x128xf32, #tpu.memory_space<vmem>>, vector<1x128xf32>,
    } else {
    }
    return
  }
  func.func @transform_0(%arg0: i32) -> (i32, i32) {
    %c0_i32 = arith.constant 0 : i32
    %c0_i32_0 = arith.constant 0 : i32
    return %arg0, %c0_i32 : i32, i32
  }
  func.func @transform_1(%arg0: i32) -> (i32, i32) {
    %c0_i32 = arith.constant 0 : i32
    %c0_i32_0 = arith.constant 0 : i32
    return %arg0, %c0_i32 : i32, i32
  }
  func.func @transform_2(%arg0: i32) -> (i32, i32) {
    %c0_i32 = arith.constant 0 : i32
    %c0_i32_0 = arith.constant 0 : i32
    %c0_i32_1 = arith.constant 0 : i32
    return %c0_i32, %c0_i32_0 : i32, i32
  }
}

</mosaic_0001>

<bundles_post_ra>
// kernel: tpu_custom_call.1
= control target key start
LH: loop header
LB: loop body
LE: loop exit
PB: predicated region body
PF: predicated region fallthrough
CT: control target
= control target key end

     0   :  { %7 = vsyncpa [#allocation10], 0  ;;  %s1078_s0 = inlined_call_operand.hbm [shape: bf16[20,128], index: 0, kind: input, shape index: {}]   ;;  %s1079_s1 = inlined_call_operand.hbm [shape: bf16[20,128], index: 1, kind: input, shape index: {}]   ;;  %s1080_s2 = inlined_call_operand.hbm [shape: f32[1,128], index: 2, kind: output, shape index: {}]  }
   0x1   :  { %9 = vsyncpa [#allocation10 + $0x1], 0 }
   0x2   :  { %10 = vsyncpa [#allocation13], 0 }
   0x3   :  { %12 = vsyncpa [#allocation13 + $0x1], 0 }
   0x4   :  { %13 = vsyncpa [#allocation11], 0  ;;  %s874_s9 = smov 0   ;;  %s876_s10 = smov 0  }
   0x5   :  { %s878_s11 = smov 0   ;;  %s880_s12 = smov 0  }
   0x6 LB: > { %s893_s13 = sadd.s32 4294967295, %s849_s12   ;;  %s896_s14 = sadd.s32 1, %s849_s12   ;;  %s849_s12 = sphi %s880_s12, %s1090_s12   ;;  %s845_s11 = sphi %s878_s11, %s1089_s11   ;;  %s841_s10 = sphi %s876_s10, %s1088_s10   ;;  %s837_s9 = sphi %s874_s9, %s1087_s9  }
   0x7   : > { %s23_s15 = ssub.s32 %s849_s12, %s896_s14  ;;  %s26_s16 = sadd.s32 1, %s845_s11 }
   0x8   : > { %p24_p0 = scmp.eq.s32.totalorder %s23_s15, 0  ;;  %p33_p1 = scmp.ne.s32.totalorder %s845_s11, %s841_s10 }
   0x9   : > { %p34_p2 = scmp.eq.s32.totalorder %s849_s12, 0  ;;  %p39_p3 = scmp.ne.s32.totalorder %s841_s10, %s837_s9 }
   0xa   : > { %s906_s17 = scalar_select %p24_p0, %s845_s11, %s26_s16  }
   0xb   : > { %p908_p4 = por %p34_p2, %p33_p1  ;;  %p40_p5 = scmp.eq.s32.totalorder %s893_s13, 0 }
   0xc   : > { %p642_p6 = scmp.lt.s32.totalorder %s849_s12, 3  ;;  %s919_s20 = sand.u32 1, %s845_s11  }
   0xd   : > { %p914_p7 = por %p40_p5, %p39_p3  ;;  %s601_s21 = sshll.u32 %s919_s20, 2 }
   0xe   : > { %s602_s22 = sshll.u32 %s849_s12, 2  ;;  %s114_s26 = scalar_lea.vmem [#allocation9], %s601_s21 }
   0xf   : > { %s118_s25 = scalar_lea.hbm %s1078_s0, %s602_s22  ;;  %s122_s27 = sshll.u32 %s114_s26, 4  ;;  %s123_s27 = int_to_ptr.vmem [resolvable:$true] %s122_s27 }
  0x10   : > { %s120_s28 = sshll.u32 %s118_s25, 4  ;;  %p928_p8 = pnand %p642_p6, %p908_p4  ;;  %s121_s28 = int_to_ptr.hbm [resolvable:$true] %s120_s28 }
  0x11   : > { %p605_p9 = scmp.ge.s32.totalorder %s849_s12, 1  ;;  %p146_p10 = scmp.lt.s32.totalorder %s849_s12, 4 }
  0x12   : > { %s111_s30 = scalar_lea.sflag [#allocation10], %s919_s20  ;;  %s719_s3 = sshra.s32 %s121_s28, 4  ;;  %s720_s3 = int_to_ptr.hbm [resolvable:$true] %s719_s3 }
  0x13   : > { %s721_s4 = scalar_lea.hbm %s720_s3, 4  ;;  %p723_p12 = pneg %p928_p8 }
  0x14   : > { %p722_p11 = scmp.ne.s32.totalorder %s720_s3, %s721_s4  ;;  %s726_s7 = scalar_lea.hbm %s1078_s0, 12 }
  0x15   : > { %p727_p1 = scmp.lt.s32.totalorder %s720_s3, %s1078_s0  ;;  %p728_p2 = scmp.lt.s32.totalorder %s726_s7, %s721_s4 }
  0x16   : > { %p724_p13 = pnand %p723_p12, %p722_p11 }
  0x17   : > { %p729_p3 = por %p728_p2, %p727_p1 }
  0x18   : > { %p725_p0 = pneg %p724_p13 }
  0x1a   : > { %p730_p4 = pnand %p729_p3, %p725_p0 }
  0x1c   : > { %733 = shalt.err (!%p730_p4)
}
  0x1d   : > { %638 = dma.hbm_to_vmem [thread:$0]  (!%p928_p8), %s121_s28, 64, %s123_s27, %s111_s30  }
  0x1e   : > { %p952_p5 = pnand %p605_p9, %p146_p10  ;;  %s137_s23 = scalar_lea.hbm %s1079_s1, %s602_s22 }
  0x1f   : > { %s133_s24 = scalar_lea.vmem [#allocation12], %s601_s21  ;;  %s139_s26 = sshll.u32 %s137_s23, 4  ;;  %s140_s26 = int_to_ptr.hbm [resolvable:$true] %s139_s26 }
  0x20   : > { %s141_s25 = sshll.u32 %s133_s24, 4  ;;  %s130_s3 = scalar_lea.sflag [#allocation13], %s919_s20  ;;  %s142_s25 = int_to_ptr.vmem [resolvable:$true] %s141_s25 }
  0x21   : > { %s749_s4 = sshra.s32 %s140_s26, 4  ;;  %s756_s28 = scalar_lea.hbm %s1079_s1, 12  ;;  %s750_s4 = int_to_ptr.hbm [resolvable:$true] %s749_s4 }
  0x22   : > { %s751_s5 = scalar_lea.hbm %s750_s4, 4  ;;  %p757_p11 = scmp.lt.s32.totalorder %s750_s4, %s1079_s1 }
  0x23   : > { %p752_p6 = scmp.ne.s32.totalorder %s750_s4, %s751_s5  ;;  %p758_p13 = scmp.lt.s32.totalorder %s756_s28, %s751_s5 }
  0x25   : > { %p754_p9 = pnand %p752_p6, %p723_p12  ;;  %p759_p0 = por %p758_p13, %p757_p11 }
  0x27   : > { %p755_p10 = pneg %p754_p9 }
  0x29   : > { %p760_p1 = pnand %p759_p0, %p755_p10 }
  0x2b   : > { %763 = shalt.err (!%p760_p1)
}
  0x2c   : > { %641 = dma.hbm_to_vmem [thread:$0]  (!%p928_p8), %s140_s26, 64, %s142_s25, %s130_s3  }
  0x2d   : > { %150 = sbr.rel (%p952_p5) target bundleno = 949 (0x3b5), region = 28  ;;  %s152_s20 = sand.u32 (!%p952_p5), 1, %s841_s10  }
  0x2e   : > { %s606_s21 = sshll.u32 (!%p952_p5), %s152_s20, 2  ;;  %s153_s6 = scalar_lea.sflag (!%p952_p5), [#allocation10], %s152_s20 }
  0x2f   : > { %s156_s7 = scalar_lea.vmem (!%p952_p5), [#allocation9], %s606_s21 }
  0x32   : > { %824 = dma.done.wait (%p914_p7), %s153_s6, 64  }
  0x33   : > { %826 = vsyncadd (%p914_p7), %s153_s6, 4294967232  ;;  %s163_s8 = scalar_lea.sflag [#allocation13], %s152_s20  ;;  %s166_s9 = scalar_lea.vmem [#allocation12], %s606_s21 }
  0x34   : > { %828 = dma.done.wait (%p914_p7), %s163_s8, 64  }
  0x35   : > { %830 = vsyncadd (%p914_p7), %s163_s8, 4294967232  ;;  %p608_p8 = scmp.ne.s32.totalorder %s893_s13, 0 }
  0x37   : > { %191 = sbr.rel (%p608_p8) target bundleno = 68 (0x44), region = 40 }
  0x3c   : > { %v851_v0 = vmov -1e+30   ;;  %v852_v1 = vmov 0.0   ;;  %vm197_vm0 = vcmask 0  }
  0x3d   : > { %192 = vst [vmem:[#allocation2] sm:$0x1] %v851_v0 }
  0x3e   : > { %193 = vst [vmem:[#allocation4] sm:$0x1] %v851_v0 }
  0x3f   : > { %194 = vst [vmem:[#allocation3] sm:$0x1] %v852_v1 }
  0x40   : > { %195 = vst [vmem:[#allocation5] sm:$0x1] %v852_v1 }
  0x41   : > { %196 = vst [vmem:[#allocation6] sm:$0x1] %v852_v1 }
  0x42   : > { %198 = vst.msk [vmem:[#allocation7] sm:$0x1] %vm197_vm0, %v852_v1 }
  0x43   : > { %199 = vst.msk [vmem:[#allocation8] sm:$0x1] %vm197_vm0, %v852_v1 }
  0x44 PF: > { %v200_v2 = vld [vmem:[%s156_s7] sm:$0xf]  ;;  %v202_v3 = vld [vmem:[%s166_s9] sm:$0xf]  ;;  %s609_s29 = sshll.u32 %s893_s13, 3  ;;  %v204_v4 = vlaneseq  ;;  %v853_v12 = vmov -100.0  }
  0x45   : > { %v201_v5 = vunpack.c.l.bf16 %v200_v2  ;;  %v206_v6 = vstv %s609_s29  ;;  %v209_v7 = vunpack.c.l.bf16 %v202_v3  ;;  %v229_v24 = vld [vmem:[#allocation2] sm:$0x1]  ;;  %v257_v36 = vld [vmem:[#allocation4] sm:$0x1]  ;;  %v854_v38 = vmov 1.0   ;;  %p613_p7 = scmp.ne.s32.totalorder %s893_s13, 2 }
  0x46   : > { %v205_v8 = vshrl.u32 %v204_v4, 7  ;;  %295 = vmatpush.msra.mxu0 %v854_v38  ;;  %324 = vmatpush.msra.mxu1 %v854_v38  ;;  %v231_v51 = vld [vmem:[#allocation3] sm:$0x1]  ;;  %vm386_vm8 = vcmask 7168   ;;  %vm399_vm9 = vcmask 0  }
  0x47   : > { %vm210_vm1 = vcmp.gt.f32.partialorder %v209_v7, 0.0  ;;  %v218_v10 = vmul.f32 -0.25, %v201_v5  ;;  %vm214_vm2 = vcmp.eq.f32.partialorder %v209_v7, 0.0  ;;  %363 = vmatpush.msra.mxu2 %v854_v38  ;;  %v259_v62 = vld [vmem:[#allocation5] sm:$0x1] }
  0x48   : > { %v207_v9 = vadd.s32 %v206_v6, %v205_v8  ;;  %296 = vmatpush.msra.mxu0 %v854_v38  ;;  %325 = vmatpush.msra.mxu1 %v854_v38 }
  0x49   : > { %364 = vmatpush.msra.mxu2 %v854_v38 }
  0x4a   : > { %vm208_vm3 = vcmp.lt.s32.totalorder %v207_v9, 20  ;;  %297 = vmatpush.msra.mxu0 %v854_v38  ;;  %326 = vmatpush.msra.mxu1 %v854_v38 }
  0x4b   : > { %vm984_vm4 = vmand %vm210_vm1, %vm208_vm3  ;;  %365 = vmatpush.msra.mxu2 %v854_v38 }
  0x4c   : > { %v216_v13 = vsel %vm984_vm4, 0.0, %v853_v12  ;;  %vm215_vm5 = vmand %vm214_vm2, %vm208_vm3  ;;  %298 = vmatpush.msra.mxu0 %v854_v38  ;;  %327 = vmatpush.msra.mxu1 %v854_v38 }
  0x4d   : > { %v219_v14 = vadd.f32 %v218_v10, %v216_v13  ;;  %v217_v15 = vsel %vm215_vm5, 0.0, %v853_v12  ;;  %366 = vmatpush.msra.mxu2 %v854_v38  ;;  %v855_v13 = vmov 0.0  }
  0x4e   : > { %v221_v18 = vadd.f32 %v217_v15, %v201_v5  ;;  %299 = vmatpush.msra.mxu0 %v854_v38  ;;  %328 = vmatpush.msra.mxu1 %v854_v38 }
  0x4f   : > { %v990_v16 = vsel %vm208_vm3, %v219_v14, -1e+30  ;;  %367 = vmatpush.msra.mxu2 %v854_v38  ;;  %v610_v14 = vsel %vm984_vm4, 1.0, %v855_v13 }
  0x50   : > { %290 = vmax.xlane.f32.xlu0 %v990_v16  ;;  %v223_v17 = vrot.slane %v990_v16, 4  ;;  %v995_v21 = vsel %vm208_vm3, %v221_v18, -1e+30  ;;  %300 = vmatpush.msra.mxu0 %v854_v38  ;;  %v282_v15 = vrot.slane %v610_v14, 4 }
  0x51   : > { %v251_v25 = vrot.slane %v995_v21, 4  ;;  %329 = vmatpush.msra.mxu1 %v854_v38  ;;  %368 = vmatpush.msra.mxu2 %v854_v38 }
  0x52   : > { %v224_v19 = vmax.f32 %v990_v16, %v223_v17  ;;  %301 = vmatpush.msra.mxu0 %v854_v38  ;;  %v283_v18 = vmax.f32 %v610_v14, %v282_v15 }
  0x53   : > { %v252_v27 = vmax.f32 %v995_v21, %v251_v25  ;;  %330 = vmatpush.msra.mxu1 %v854_v38  ;;  %369 = vmatpush.msra.mxu2 %v854_v38 }
  0x54   : > { %v225_v20 = vrot.slane %v224_v19, 2  ;;  %302 = vmatpush.msra.mxu0 %v854_v38 }
  0x55   : > { %v253_v29 = vrot.slane %v252_v27, 2  ;;  %331 = vmatpush.msra.mxu1 %v854_v38  ;;  %370 = vmatpush.msra.mxu2 %v854_v38 }
  0x56   : > { %v226_v22 = vmax.f32 %v224_v19, %v225_v20  ;;  %303 = vmatpush.msra.mxu0 %v854_v38 }
  0x57   : > { %v254_v31 = vmax.f32 %v252_v27, %v253_v29  ;;  %332 = vmatpush.msra.mxu1 %v854_v38  ;;  %371 = vmatpush.msra.mxu2 %v854_v38 }
  0x58   : > { %v227_v23 = vrot.slane %v226_v22, 1  ;;  %319 = vmax.xlane.f32.xlu0 %v995_v21  ;;  %304 = vmatpush.msra.mxu0 %v854_v38 }
  0x59   : > { %v255_v33 = vrot.slane %v254_v31, 1  ;;  %333 = vmatpush.msra.mxu1 %v854_v38  ;;  %372 = vmatpush.msra.mxu2 %v854_v38 }
  0x5a   : > { %v228_v26 = vmax.f32 %v226_v22, %v227_v23  ;;  %305 = vmatpush.msra.mxu0 %v854_v38  ;;  %v281_v23 = vld [vmem:[#allocation6] sm:$0x1] }
  0x5b   : > { %v256_v37 = vmax.f32 %v254_v31, %v255_v33  ;;  %334 = vmatpush.msra.mxu1 %v854_v38  ;;  %373 = vmatpush.msra.mxu2 %v854_v38 }
  0x5c   : > { %v230_v28 = vmax.f32 %v229_v24, %v228_v26  ;;  %306 = vmatpush.msra.mxu0 %v854_v38 }
  0x5d   : > { %v258_v39 = vmax.f32 %v257_v36, %v256_v37  ;;  %335 = vmatpush.msra.mxu1 %v854_v38  ;;  %374 = vmatpush.msra.mxu2 %v854_v38 }
  0x5e   : > { %v237_v30 = vperm.slane %v230_v28, 0  ;;  %250 = vst [vmem:[#allocation2] sm:$0x1] %v230_v28  ;;  %v232_v34 = vsub.f32 %v229_v24, %v230_v28  ;;  %307 = vmatpush.msra.mxu0 %v854_v38 }
  0x5f   : > { %v265_v41 = vperm.slane %v258_v39, 0  ;;  %278 = vst [vmem:[#allocation4] sm:$0x1] %v258_v39  ;;  %v260_v45 = vsub.f32 %v257_v36, %v258_v39  ;;  %336 = vmatpush.msra.mxu1 %v854_v38  ;;  %375 = vmatpush.msra.mxu2 %v854_v38 }
  0x60   : > { %v239_v32 = vsub.f32 %v990_v16, %v237_v30  ;;  %v233_v40 = vmul.f32 1.442695, %v232_v34  ;;  %308 = vmatpush.msra.mxu0 %v854_v38 }
  0x61   : > { %v267_v42 = vsub.f32 %v995_v21, %v265_v41  ;;  %v261_v49 = vmul.f32 1.442695, %v260_v45  ;;  %337 = vmatpush.msra.mxu1 %v854_v38  ;;  %376 = vmatpush.msra.mxu2 %v854_v38 }
  0x62   : > { %v240_v35 = vmul.f32 1.442695, %v239_v32  ;;  %309 = vmatpush.msra.mxu0 %v854_v38 }
  0x63   : > { %v268_v46 = vmul.f32 1.442695, %v267_v42  ;;  %338 = vmatpush.msra.mxu1 %v854_v38  ;;  %377 = vmatpush.msra.mxu2 %v854_v38 }
  0x64   : > { %685 = vpow2.f32 %v240_v35  ;;  %310 = vmatpush.msra.mxu0 %v854_v38 }
  0x65   : > { %687 = vpow2.f32 %v233_v40  ;;  %339 = vmatpush.msra.mxu1 %v854_v38  ;;  %378 = vmatpush.msra.mxu2 %v854_v38 }
  0x66   : > { %689 = vpow2.f32 %v268_v46  ;;  %611 = vmatmul.msk.f32.vlgmr.msra.gmra.mxu2 %vm984_vm4, %v854_v38 }
  0x67   : > { %691 = vpow2.f32 %v261_v49 }
  0x6a   : > { %v686_v43 = vpop.eup %685 }
  0x6b   : > { %v242_v44 = vrot.slane %v686_v43, 4  ;;  %v688_v50 = vpop.eup %687 }
  0x6c   : > { %v690_v53 = vpop.eup %689  ;;  %v235_v54 = vmul.f32 %v688_v50, %v231_v51 }
  0x6d   : > { %v243_v47 = vadd.f32 %v686_v43, %v242_v44  ;;  %v270_v56 = vrot.slane %v690_v53, 4  ;;  %v692_v61 = vpop.eup %691 }
  0x6e   : > { %v263_v0 = vmul.f32 %v692_v61, %v259_v62 }
  0x6f   : > { %v244_v48 = vrot.slane %v243_v47, 2  ;;  %v271_v58 = vadd.f32 %v690_v53, %v270_v56 }
  0x71   : > { %v245_v52 = vadd.f32 %v244_v48, %v243_v47  ;;  %v272_v60 = vrot.slane %v271_v58, 2 }
  0x73   : > { %v246_v55 = vrot.slane %v245_v52, 1  ;;  %v273_v63 = vadd.f32 %v272_v60, %v271_v58 }
  0x75   : > { %v247_v57 = vadd.f32 %v246_v55, %v245_v52  ;;  %v274_v1 = vrot.slane %v273_v63, 1 }
  0x77   : > { %v248_v59 = vadd.f32 %v247_v57, %v235_v54  ;;  %v275_v2 = vadd.f32 %v274_v1, %v273_v63  ;;  %v384_v1 = vld [vmem:[#allocation7] sm:$0x1] }
  0x79   : > { %249 = vst [vmem:[#allocation3] sm:$0x1] %v248_v59  ;;  %v276_v3 = vadd.f32 %v275_v2, %v263_v0 }
  0x7b   : > { %277 = vst [vmem:[#allocation5] sm:$0x1] %v276_v3 }
  0xc3   : > { %v291_v4 = vpop.xlane.xlu0 %290 }
  0xc4   : > { %v292_v5 = vsub.f32 %v990_v16, %v291_v4  ;;  %v284_v16 = vrot.slane %v283_v18, 2 }
  0xc6   : > { %v293_v6 = vmul.f32 1.442695, %v292_v5  ;;  %v285_v19 = vmax.f32 %v283_v18, %v284_v16 }
  0xc8   : > { %693 = vpow2.f32 %v293_v6  ;;  %v286_v20 = vrot.slane %v285_v19, 1 }
  0xca   : > { %v287_v24 = vmax.f32 %v285_v19, %v286_v20 }
  0xcb   : > { %v320_v7 = vpop.xlane.xlu0 %319 }
  0xcc   : > { %v321_v8 = vsub.f32 %v995_v21, %v320_v7  ;;  %v288_v26 = vmax.f32 %v281_v23, %v287_v24 }
  0xce   : > { %v694_v9 = vpop.eup %693  ;;  %v322_v10 = vmul.f32 1.442695, %v321_v8  ;;  %289 = vst [vmem:[#allocation6] sm:$0x1] %v288_v26 }
  0xcf   : > { %311 = vmatmul.f32.vlgmr.msra.gmra.mxu0 %v694_v9 }
  0xd0   : > { %695 = vpow2.f32 %v322_v10 }
  0xd6   : > { %v696_v12 = vpop.eup %695 }
  0xd7   : > { %340 = vmatmul.f32.vlgmr.msra.gmra.mxu1 %v696_v12 }
  0xe9   : > { %v380_v41 = vpop.f32.mrf.mxu2 }
  0xea   : > { %vm383_vm7 = vcmp.gt.f32.partialorder %v380_v41, 0.0 }
  0xeb   : > { %v612_v49 = vsel %vm383_vm7, 1.0, %v855_v13 }
  0xec   : > { %v404_v50 = vsel %vm386_vm8, %v612_v49, 0.0 }
 0x14c   : > { %v312_v17 = vpop.f32.mrf.mxu0 }
 0x14d   : > { %697 = vlog2.f32 %v312_v17 }
 0x153   : > { %v698_v22 = vpop.eup %697 }
 0x154   : > { %v341_v21 = vpop.f32.mrf.mxu1  ;;  %v316_v25 = vmul.f32 0.6931472, %v698_v22 }
 0x155   : > { %699 = vlog2.f32 %v341_v21 }
 0x156   : > { %v317_v27 = vadd.f32 %v316_v25, %v291_v4  ;;  %v401_v4 = vld [vmem:[#allocation8] sm:$0x1] }
 0x158   : > { %v318_v11 = vmul.f32 4.0, %v317_v27 }
 0x15b   : > { %v700_v28 = vpop.eup %699 }
 0x15c   : > { %v345_v29 = vmul.f32 0.6931472, %v700_v28 }
 0x15e   : > { %v346_v30 = vadd.f32 %v345_v29, %v320_v7 }
 0x160   : > { %v347_v31 = vadd.f32 %v346_v30, %v318_v11 }
 0x162   : > { %v349_v32 = vand.u32 2147483647, %v347_v31  ;;  %v348_v44 = vmax.f32 %v347_v31, 0.0 }
 0x164   : > { %v350_v33 = vsub.f32 0.0, %v349_v32 }
 0x166   : > { %v351_v34 = vmul.f32 1.442695, %v350_v33 }
 0x168   : > { %701 = vpow2.f32 %v351_v34 }
 0x16e   : > { %v702_v35 = vpop.eup %701 }
 0x16f   : > { %v353_v36 = vadd.f32 1.0, %v702_v35  ;;  %v356_v37 = vmul.f32 -0.5, %v702_v35  ;;  %v359_v39 = vand.u32 2147483647, %v702_v35 }
 0x171   : > { %703 = vlog2.f32 %v353_v36  ;;  %v357_v38 = vadd.f32 1.0, %v356_v37  ;;  %vm360_vm6 = vcmp.lt.f32.partialorder %v359_v39, 0.0004427343 }
 0x173   : > { %v358_v43 = vmul.f32 %v702_v35, %v357_v38 }
 0x177   : > { %v704_v40 = vpop.eup %703 }
 0x178   : > { %v355_v42 = vmul.f32 0.6931472, %v704_v40 }
 0x17a   : > { %v361_v45 = vsel %vm360_vm6, %v358_v43, %v355_v42 }
 0x17b   : > { %v362_v46 = vadd.f32 %v361_v45, %v348_v44 }
 0x17d   : > { %v385_v47 = vsel %vm383_vm7, %v362_v46, 0.0 }
 0x17e   : > { %v387_v48 = vsel %vm386_vm8, %v385_v47, 0.0 }
 0x17f   : > { %388 = vadd.xlane.f32.xlu1 %v387_v48 }
 0x187   : > { %405 = vadd.xlane.f32.xlu1 %v404_v50 }
 0x1f2   : > { %v389_v51 = vpop.xlane.xlu1 %388 }
 0x1f3   : > { %v390_v52 = vrot.slane %v389_v51, 4 }
 0x1f5   : > { %v391_v53 = vadd.f32 %v390_v52, %v389_v51 }
 0x1f7   : > { %v392_v54 = vrot.slane %v391_v53, 2 }
 0x1f9   : > { %v393_v55 = vadd.f32 %v392_v54, %v391_v53 }
 0x1fa   : > { %v406_v56 = vpop.xlane.xlu1 %405 }
 0x1fb   : > { %v407_v57 = vrot.slane %v406_v56, 4  ;;  %v394_v58 = vrot.slane %v393_v55, 1 }
 0x1fd   : > { %v408_v59 = vadd.f32 %v407_v57, %v406_v56  ;;  %v395_v60 = vadd.f32 %v394_v58, %v393_v55 }
 0x1ff   : > { %v409_v61 = vrot.slane %v408_v59, 2  ;;  %619 = vpush %v395_v60 }
 0x201   : > { %v410_v62 = vadd.f32 %v409_v61, %v408_v59 }
 0x203   : > { %v411_v63 = vrot.slane %v410_v62, 1 }
 0x205   : > { %v412_v0 = vadd.f32 %v411_v63, %v410_v62 }
 0x207   : > { %621 = vpush %v412_v0 }
 0x230   : > { %s620_s19 = spop %619 }
 0x231   : > { %v397_v2 = vstv %s620_s19 }
 0x232   : > { %v398_v3 = vadd.f32 %v397_v2, %v384_v1 }
 0x234   : > { %400 = vst.msk [vmem:[#allocation7] sm:$0x1] %vm399_vm9, %v398_v3 }
 0x238   : > { %s622_s15 = spop %621  ;;  %420 = sbr.rel (%p613_p7) target bundleno = 944 (0x3b0), region = 44 }
 0x239   : > { %v414_v5 = vstv %s622_s15 }
 0x23a   : > { %v415_v6 = vadd.f32 %v414_v5, %v401_v4 }
 0x23c   : > { %416 = vst.msk [vmem:[#allocation8] sm:$0x1] %vm399_vm9, %v415_v6 }
 0x23d   : > { %v422_v7 = vld [vmem:[#allocation3] sm:$0x1]  ;;  %v428_v8 = vld [vmem:[#allocation5] sm:$0x1]  ;;  %v421_v10 = vld [vmem:[#allocation2] sm:$0x1] }
 0x23e   : > { %707 = vlog2.f32 %v422_v7  ;;  %v427_v14 = vld [vmem:[#allocation4] sm:$0x1]  ;;  %v448_v30 = vld [vmem:[#allocation6] sm:$0x1]  ;;  %vm451_vm12 = vcmask 1040384   ;;  %v856_v36 = vmov 0.0  }
 0x23f   : > { %709 = vlog2.f32 %v428_v8  ;;  %vm449_vm11 = vcmp.gt.f32.partialorder %v448_v30, 0.0  ;;  %v857_v54 = vmov 0   ;;  %v491_v7 = vld [vmem:[#allocation7] sm:$0x1] }
 0x240   : > { %v614_v37 = vsel %vm449_vm11, 1.0, %v856_v36  ;;  %705 = vset.pattern.permute.xlu1 %v857_v54  ;;  %706 = vset.pattern.permute.xlu0 %v857_v54 }
 0x241   : > { %v465_v38 = vsel %vm451_vm12, %v614_v37, 0.0 }
 0x243   : > { %v492_v53 = vld [vmem:[#allocation8] sm:$0x1] }
 0x244   : > { %v708_v9 = vpop.eup %707  ;;  %vm498_vm13 = vweird.f32 %v492_v53  ;;  %v504_v60 = vand.u32 2147483648, %v492_v53  ;;  %v502_v62 = vand.u32 2147483647, %v492_v53 }
 0x245   : > { %v710_v12 = vpop.eup %709  ;;  %v424_v13 = vmul.f32 0.6931472, %v708_v9 }
 0x246   : > { %v430_v15 = vmul.f32 0.6931472, %v710_v12  ;;  %v505_v1 = vor.u32 1.1754944e-38, %v504_v60  ;;  %vm503_vm0 = vcmp.eq.f32.partialorder %v502_v62, 8.507059e+37 }
 0x247   : > { %v425_v17 = vadd.f32 %v424_v13, %v421_v10 }
 0x248   : > { %v431_v18 = vadd.f32 %v430_v15, %v427_v14 }
 0x249   : > { %v426_v16 = vmul.f32 4.0, %v425_v17 }
 0x24b   : > { %v432_v19 = vadd.f32 %v431_v18, %v426_v16 }
 0x24d   : > { %v434_v20 = vand.u32 2147483647, %v432_v19  ;;  %v433_v11 = vmax.f32 %v432_v19, 0.0 }
 0x24f   : > { %v435_v22 = vsub.f32 0.0, %v434_v20 }
 0x251   : > { %v436_v23 = vmul.f32 1.442695, %v435_v22 }
 0x253   : > { %711 = vpow2.f32 %v436_v23 }
 0x259   : > { %v712_v21 = vpop.eup %711 }
 0x25a   : > { %v438_v24 = vadd.f32 1.0, %v712_v21  ;;  %v441_v25 = vmul.f32 -0.5, %v712_v21  ;;  %v444_v27 = vand.u32 2147483647, %v712_v21 }
 0x25c   : > { %713 = vlog2.f32 %v438_v24  ;;  %v442_v26 = vadd.f32 1.0, %v441_v25  ;;  %vm445_vm10 = vcmp.lt.f32.partialorder %v444_v27, 0.0004427343 }
 0x25d   : > { %715 = vrcp.f32 %v492_v53 }
 0x25e   : > { %v443_v28 = vmul.f32 %v712_v21, %v442_v26 }
 0x262   : > { %v714_v29 = vpop.eup %713 }
 0x263   : > { %v440_v31 = vmul.f32 0.6931472, %v714_v29  ;;  %v716_v55 = vpop.eup %715 }
 0x264   : > { %v494_v56 = vmul.f32 %v716_v55, %v492_v53  ;;  %vm499_vm14 = vweird.f32 %v716_v55 }
 0x265   : > { %v446_v32 = vsel %vm445_vm10, %v443_v28, %v440_v31  ;;  %vm500_vm15 = vmor %vm498_vm13, %vm499_vm14 }
 0x266   : > { %v447_v33 = vadd.f32 %v446_v32, %v433_v11  ;;  %v495_v57 = vsub.f32 1.0, %v494_v56 }
 0x268   : > { %v450_v34 = vsel %vm449_vm11, %v447_v33, 0.0  ;;  %v496_v59 = vmul.f32 %v716_v55, %v495_v57 }
 0x269   : > { %v452_v35 = vsel %vm451_vm12, %v450_v34, 0.0 }
 0x26a   : > { %453 = vadd.xlane.f32.xlu0 %v452_v35  ;;  %v497_v61 = vadd.f32 %v716_v55, %v496_v59 }
 0x26c   : > { %v501_v3 = vsel %vm500_vm15, %v716_v55, %v497_v61 }
 0x26d   : > { %v506_v8 = vsel %vm503_vm0, %v505_v1, %v501_v3 }
 0x26e   : > { %v507_v13 = vmul.f32 %v506_v8, %v491_v7 }
 0x272   : > { %466 = vadd.xlane.f32.xlu0 %v465_v38 }
 0x2dd   : > { %v454_v39 = vpop.xlane.xlu0 %453 }
 0x2de   : > { %v455_v40 = vrot.slane %v454_v39, 4 }
 0x2e0   : > { %v456_v41 = vadd.f32 %v455_v40, %v454_v39 }
 0x2e2   : > { %v457_v42 = vrot.slane %v456_v41, 2 }
 0x2e4   : > { %v458_v43 = vadd.f32 %v457_v42, %v456_v41 }
 0x2e5   : > { %v467_v44 = vpop.xlane.xlu0 %466 }
 0x2e6   : > { %v468_v45 = vrot.slane %v467_v44, 4  ;;  %v459_v46 = vrot.slane %v458_v43, 1 }
 0x2e8   : > { %v469_v47 = vadd.f32 %v468_v45, %v467_v44  ;;  %v460_v48 = vadd.f32 %v459_v46, %v458_v43 }
 0x2ea   : > { %v470_v49 = vrot.slane %v469_v47, 2  ;;  %623 = vpush %v460_v48 }
 0x2ec   : > { %v471_v50 = vadd.f32 %v470_v49, %v469_v47 }
 0x2ee   : > { %v472_v51 = vrot.slane %v471_v50, 1 }
 0x2f0   : > { %v473_v52 = vadd.f32 %v472_v51, %v471_v50 }
 0x2f2   : > { %625 = vpush %v473_v52 }
 0x31b   : > { %s1058_s16 = spop %623 }
 0x31c   : > { %v462_v14 = vstv %s1058_s16 }
 0x323   : > { %s626_s18 = spop %625 }
 0x324   : > { %v475_v58 = vstv %s626_s18 }
 0x325   : > { %717 = vrcp.f32 %v475_v58  ;;  %v487_v4 = vand.u32 2147483648, %v475_v58  ;;  %v485_v6 = vand.u32 2147483647, %v475_v58  ;;  %vm481_vm2 = vweird.f32 %v475_v58 }
 0x327   : > { %v488_v10 = vor.u32 1.1754944e-38, %v487_v4  ;;  %vm486_vm4 = vcmp.eq.f32.partialorder %v485_v6, 8.507059e+37 }
 0x32b   : > { %v718_v63 = vpop.eup %717 }
 0x32c   : > { %v477_v0 = vmul.f32 %v718_v63, %v475_v58  ;;  %vm482_vm1 = vweird.f32 %v718_v63 }
 0x32d   : > { %vm483_vm3 = vmor %vm481_vm2, %vm482_vm1 }
 0x32e   : > { %v478_v2 = vsub.f32 1.0, %v477_v0 }
 0x330   : > { %v479_v5 = vmul.f32 %v718_v63, %v478_v2 }
 0x332   : > { %v480_v9 = vadd.f32 %v718_v63, %v479_v5 }
 0x334   : > { %v484_v12 = vsel %vm483_vm3, %v718_v63, %v480_v9 }
 0x335   : > { %v489_v15 = vsel %vm486_vm4, %v488_v10, %v484_v12 }
 0x336   : > { %v490_v17 = vmul.f32 %v489_v15, %v462_v14 }
 0x338   : > { %v508_v18 = vadd.f32 %v507_v13, %v490_v17 }
 0x33a   : > { %511 = vperm.xlu1 %705, %v508_v18  }
 0x3ac   : > { %v512_v16 = vpop.permute.xlu1 %511 }
 0x3ad   : > { %v514_v19 = vperm.slane %v512_v16, 0 }
 0x3af   : > { %515 = vst [vmem:[#allocation14] sm:$0x1] %v514_v19 }
 0x3b0 PF: > { %p643_p12 = scmp.eq.s32.totalorder %s893_s13, 2  ;;  %s858_s23 = smov [#allocation14]  }
 0x3b1   : > { %s522_s24 = sshll.u32 %s858_s23, 4  ;;  %s524_s3 = sshll.u32 %s1080_s2, 4  ;;  %s523_s24 = int_to_ptr.vmem [resolvable:$true] %s522_s24  ;;  %s525_s3 = int_to_ptr.hbm [resolvable:$true] %s524_s3 }
 0x3b2   : > { %632 = dma.vmem_to_hbm [thread:$0]  (%p643_p12), %s523_s24, 16, %s525_s3, [#allocation11]  }
 0x3b3   : > { %832 = dma.done.wait (%p643_p12), [#allocation11], 16  }
 0x3b4   : > { %834 = vsyncadd (%p643_p12), [#allocation11], 4294967280 }
 0x3b5 PF: > { %p16_p2 = scmp.ge.s32.totalorder %s896_s14, 5   ;;  %s1087_s9 = smov %s841_s10 }
 0x3b6   : > { %s1088_s10 = smov %s845_s11  ;;  %s1089_s11 = smov %s906_s17 }
 0x3b7   : > { %s1090_s12 = smov %s896_s14  ;;  %18 = sbr.rel (!%p16_p2) target bundleno = 6 (0x6), region = 86 }
 0x3bc   :  { %538 = vsyncpa [#allocation10], 1 }
 0x3bd   :  { %540 = vsyncpa [#allocation10 + $0x1], 1 }
 0x3be   :  { %541 = vsyncpa [#allocation13], 1 }
 0x3bf   :  { %543 = vsyncpa [#allocation13 + $0x1], 1 }
 0x3c0   :  { %544 = vsyncpa [#allocation11], 1 }
 0x3c1   :  { %546 = vsyncpa [#allocation11 + $0x1], 1 }

</bundles_post_ra>
